<compile_context>
chip_gen: v6e
topology: v6e:2x2x1
jax: 0.10.0
libtpu: 0.0.40
codegen_flags: <defaults>
</compile_context>

<pallas_src>
import math
from functools import partial

import jax
import jax.numpy as jnp
from jax.experimental import pallas as pl
from jax.experimental.pallas import tpu as pltpu


_ACT_DTYPE = jnp.bfloat16      # inter-layer activation / matmul operand dtype


def _round_up(x, m):
    return ((x + m - 1) // m) * m


# ----------------------------------------------------------------------------
# Fused kernel: one image per grid step.
#   x_ref : (sh, sw, Cin_p, Hq*Wq)  phase-split, zero-padded image (bf16)
#   w_ref : (Kh, Kw, Cout, Cin_p)   resident across the grid (bf16)
#   b_ref : (Cout, 1)               resident, f32
#   o_ref : (Cout, Ho*Wq)           lane-dense output block
#
# For tap (kh, kw) with kh = qh*sh + rh and kw = qw*sw + rw, the contiguous
# slice x_ref[rh, rw, :, qh*Wq+qw : qh*Wq+qw + Ho*Wq] is exactly the im2col
# row block for that tap.  Its tail elements that "wrap" into the next phase
# row only feed output columns wo >= Wo, which the wrapper discards.
# ----------------------------------------------------------------------------
def _fused_conv_hardtanh_kernel(x_ref, w_ref, b_ref, o_ref, *,
                                Kh, Kw, sh, sw, Ho, Wq):
    L = Ho * Wq
    Cout = w_ref.shape[2]
    acc = jnp.zeros((Cout, L), jnp.float32)
    for kh in range(Kh):                         # unrolled at trace time
        qh, rh = kh // sh, kh % sh
        for kw in range(Kw):
            qw, rw = kw // sw, kw % sw
            start = qh * Wq + qw                 # static python int
            slab = x_ref[rh, rw, :, start:start + L]          # (Cin_p, L)
            w_tap = w_ref[kh, kw, :, :]                        # (Cout, Cin_p)
            acc = acc + jnp.dot(w_tap, slab,
                                preferred_element_type=jnp.float32)
    acc = acc + b_ref[...]                                     # lane broadcast
    o_ref[...] = jnp.clip(acc, 0.0, 20.0).astype(o_ref.dtype)  # Hardtanh(0,20)


# ----------------------------------------------------------------------------
# One Conv2dSame(stride) + Hardtanh(0,20) layer.
# x: (N, C, H, W_alloc); only columns [0, valid_w) are valid input.
# Returns ((N, Cout, Ho, Wq) activation, valid output width Wo).
# ----------------------------------------------------------------------------
def _conv2d_same_hardtanh(x, valid_w, weight, bias, stride, out_dtype):
    N, C, H, W_alloc = x.shape
    Cout, Cin, Kh, Kw = weight.shape
    sh, sw = stride
    Wv = valid_w

    # TF-style "same" geometry (identical to Conv2dSame with dilation=1).
    Ho, Wo = -(-H // sh), -(-Wv // sw)
    ph = max(0, (Ho - 1) * sh + Kh - H)
    pw = max(0, (Wo - 1) * sw + Kw - Wv)

    # Stride-phase grid sizes.  The +1 phase row keeps every per-tap slice of
    # length Ho*Wq in bounds (its tail only feeds discarded columns wo >= Wo).
    qh_max, qw_max = (Kh - 1) // sh, (Kw - 1) // sw
    Hq = Ho + qh_max + (1 if qw_max > 0 else 0)
    Wq = Wo + qw_max
    pad_top, pad_left = ph // 2, pw // 2
    pad_bot = Hq * sh - H - pad_top                 # >= ph - ph//2 by construction
    pad_right = Wq * sw - Wv - pad_left             # >= pw - pw//2 by construction

    sub = 16 if _ACT_DTYPE == jnp.bfloat16 else 8
    Cin_p = _round_up(Cin, sub)                     # sublane padding only, never 128

    # Pad + phase-split: the ONLY per-layer HBM glue pass (no im2col slab).
    xs = x if Wv == W_alloc else x[:, :, :, :Wv]
    x_pad = jnp.pad(xs.astype(_ACT_DTYPE),
                    ((0, 0), (0, Cin_p - Cin),
                     (pad_top, pad_bot), (pad_left, pad_right)))
    x_ph = (x_pad.reshape(N, Cin_p, Hq, sh, Wq, sw)
                 .transpose(0, 3, 5, 1, 2, 4)
                 .reshape(N, sh, sw, Cin_p, Hq * Wq))

    w_t = jnp.transpose(
        jnp.pad(weight, ((0, 0), (0, Cin_p - Cin), (0, 0), (0, 0))),
        (2, 3, 0, 1)).astype(_ACT_DTYPE)            # (Kh, Kw, Cout, Cin_p), tiny
    b2 = bias.astype(jnp.float32).reshape(Cout, 1)

    L = Ho * Wq
    act_bytes = jnp.dtype(_ACT_DTYPE).itemsize
    out_bytes = jnp.dtype(out_dtype).itemsize
    # Actual per-step VMEM need: double-buffered in/out blocks + resident
    # weights + f32 accumulator + per-tap slab copies.  v5e's scoped default
    # is only 16 MiB, so pass an explicit limit sized to the real tiles.
    need = (2 * sh * sw * Cin_p * Hq * Wq * act_bytes
            + Kh * Kw * Cout * Cin_p * act_bytes
            + 2 * Cout * L * out_bytes
            + 3 * Cout * L * 4
            + 2 * Cin_p * L * act_bytes)
    vmem_limit = int(min(48 * 2**20, max(2 * need + (1 << 20), 20 * 2**20)))

    kernel = partial(_fused_conv_hardtanh_kernel,
                     Kh=Kh, Kw=Kw, sh=sh, sw=sw, Ho=Ho, Wq=Wq)

    out_flat = pl.pallas_call(
        kernel,
        out_shape=jax.ShapeDtypeStruct((N, Cout, L), out_dtype),
        grid=(N,),
        in_specs=[
            pl.BlockSpec((None, sh, sw, Cin_p, Hq * Wq),
                         lambda n: (n, 0, 0, 0, 0)),            # one image / step
            pl.BlockSpec((Kh, Kw, Cout, Cin_p), lambda n: (0, 0, 0, 0)),
            pl.BlockSpec((Cout, 1), lambda n: (0, 0)),
        ],
        out_specs=pl.BlockSpec((None, Cout, L), lambda n: (n, 0, 0)),
        compiler_params=pltpu.CompilerParams(
            dimension_semantics=("parallel",),
            vmem_limit_bytes=vmem_limit),
        cost_estimate=pl.CostEstimate(
            flops=2 * N * Cout * Cin * Kh * Kw * Ho * Wo,
            transcendentals=0,
            bytes_accessed=(x_ph.size * act_bytes + w_t.size * act_bytes
                            + b2.size * 4 + N * Cout * L * out_bytes)),
    )(x_ph, w_t, b2)

    return out_flat.reshape(N, Cout, Ho, Wq), Wo


# ----------------------------------------------------------------------------
# Convolutions module (stack of layers), batch_norm=False
# ----------------------------------------------------------------------------
def init_convolutions_params(conv_layers, initial_channels, key):
    params = []
    c_in = initial_channels
    for i, layer in enumerate(conv_layers):
        c_out = layer['num_chan']
        kh, kw = layer['kernel']
        k_w, k_b = jax.random.split(jax.random.fold_in(key, i))
        fan_in = c_in * kh * kw
        bound = 1.0 / math.sqrt(fan_in)
        weight = jax.random.uniform(k_w, (c_out, c_in, kh, kw),
                                    jnp.float32, -bound, bound)
        bias = jax.random.uniform(k_b, (c_out,), jnp.float32, -bound, bound)
        params.append({'weight': weight, 'bias': bias,
                       'stride': tuple(layer['stride'])})
        c_in = c_out
    return params


@partial(jax.jit, static_argnums=(3,))
def _convolutions_forward_jit(weights, biases, x_nchw, strides):
    y, valid_w = x_nchw, x_nchw.shape[3]
    n_layers = len(weights)
    for i, (w, b, s) in enumerate(zip(weights, biases, strides)):
        out_dtype = jnp.float32 if i == n_layers - 1 else _ACT_DTYPE
        y, valid_w = _conv2d_same_hardtanh(y, valid_w, w, b, s, out_dtype)
    return y[:, :, :, :valid_w]      # drop the (Wq - Wo) helper columns once


def convolutions_forward(params, x_nchw):
    weights = tuple(p['weight'] for p in params)
    biases = tuple(p['bias'] for p in params)
    strides = tuple(p['stride'] for p in params)
    return _convolutions_forward_jit(weights, biases, x_nchw, strides)


# Pure-JAX f32 reference (for correctness check only).
def _reference_forward(params, x):
    for p in params:
        w, b, (sh, sw) = p['weight'], p['bias'], p['stride']
        N, C, H, W = x.shape
        Kh, Kw = w.shape[2], w.shape[3]
        h2, w2 = math.ceil(H / sh), math.ceil(W / sw)
        pr = max(0, (h2 - 1) * sh + (Kh - 1) + 1 - H)
        pc = max(0, (w2 - 1) * sw + (Kw - 1) + 1 - W)
        y = jax.lax.conv_general_dilated(
            x, w, window_strides=(sh, sw),
            padding=((pr // 2, pr - pr // 2), (pc // 2, pc - pc // 2)),
            dimension_numbers=('NCHW', 'OIHW', 'NCHW'))
        x = jnp.clip(y + b[None, :, None, None], 0.0, 20.0)
    return x


if __name__ == "__main__":
    # Small DeepSpeech-style config: NxCxFxT input.
    conv_layers = [
        {'num_chan': 8,  'kernel': (3, 3), 'stride': (2, 2)},
        {'num_chan': 16, 'kernel': (3, 3), 'stride': (2, 1)},
    ]
    initial_channels = 1

    key = jax.random.PRNGKey(0)
    k_x, k_p = jax.random.split(key)
    x = jax.random.normal(k_x, (2, initial_channels, 16, 16), jnp.float32)

    params = init_convolutions_params(conv_layers, initial_channels, k_p)

    out = jax.block_until_ready(convolutions_forward(params, x))
    ref = _reference_forward(params, x)

    assert out.shape == ref.shape, (out.shape, ref.shape)
    # bf16 inter-layer activations -> loosened tolerance vs. the f32 reference.
    assert jnp.allclose(out, ref, atol=2e-2, rtol=2e-2), \
        float(jnp.max(jnp.abs(out - ref)))

    print("KERNEL_OK")
</pallas_src>

<mosaic_0001>
module attributes {stable_mosaic.version = 11 : i64} {
  func.func @_fused_conv_hardtanh_kernel(%arg0: i32, %arg1: memref<1x2x2x16x90xbf16, #tpu.memory_space<vmem>>, %arg2: memref<3x3x8x16xbf16, #tpu.memory_space<vmem>>, %arg3: memref<8x1xf32, #tpu.memory_space<vmem>>, %arg4: memref<1x8x72xbf16, #tpu.memory_space<vmem>>) attributes {dimension_semantics = [#tpu.dimension_semantics<parallel>], iteration_bounds = array<i64: 2>, scalar_prefetch = 0 : i64, scratch_operands = 0 : i64, tpu.core_type = #tpu.core_type<tc>, window_params = [{transform_indices = @transform_0, window_bounds = array<i64: 1, 2, 2, 16, 90>}, {pipeline_mode = #tpu.pipeline_mode<synchronous>, transform_indices = @transform_1, window_bounds = array<i64: 3, 3, 8, 16>}, {pipeline_mode = #tpu.pipeline_mode<synchronous>, transform_indices = @transform_2, window_bounds = array<i64: 8, 1>}, {transform_indices = @transform_3, window_bounds = array<i64: 1, 8, 72>}]} {
    %cst = arith.constant 0.000000e+00 : f32
    %0 = vector.broadcast %cst : f32 to vector<8x72xf32>
    %c0 = arith.constant 0 : index
    %c0_0 = arith.constant 0 : index
    %c0_1 = arith.constant 0 : index
    %c0_2 = arith.constant 0 : index
    %c0_3 = arith.constant 0 : index
    %1 = vector.load %arg1[%c0, %c0_0, %c0_1, %c0_2, %c0_3] : memref<1x2x2x16x90xbf16, #tpu.memory_space<vmem>>, vector<1x1x1x16x72xbf16>
    %2 = vector.shape_cast %1 : vector<1x1x1x16x72xbf16> to vector<16x72xbf16>
    %c0_4 = arith.constant 0 : index
    %c0_5 = arith.constant 0 : index
    %c0_6 = arith.constant 0 : index
    %c0_7 = arith.constant 0 : index
    %3 = vector.load %arg2[%c0_4, %c0_5, %c0_6, %c0_7] : memref<3x3x8x16xbf16, #tpu.memory_space<vmem>>, vector<1x1x8x16xbf16>
    %4 = vector.shape_cast %3 : vector<1x1x8x16xbf16> to vector<8x16xbf16>
    %cst_8 = arith.constant dense<0.000000e+00> : vector<8x72xf32>
    %5 = tpu.matmul %4, %2, %cst_8 {dimension_numbers = #tpu.dot_dimension_numbers<[1], [0], [0], [1], [0, 0, 1, 1], [], []>} : vector<8x16xbf16>, vector<16x72xbf16>, vector<8x72xf32> -> vector<8x72xf32>
    %6 = arith.addf %0, %5 : vector<8x72xf32>
    %c0_9 = arith.constant 0 : index
    %c0_10 = arith.constant 0 : index
    %c1 = arith.constant 1 : index
    %c0_11 = arith.constant 0 : index
    %c0_12 = arith.constant 0 : index
    %7 = vector.load %arg1[%c0_9, %c0_10, %c1, %c0_11, %c0_12] : memref<1x2x2x16x90xbf16, #tpu.memory_space<vmem>>, vector<1x1x1x16x72xbf16>
    %8 = vector.shape_cast %7 : vector<1x1x1x16x72xbf16> to vector<16x72xbf16>
    %c0_13 = arith.constant 0 : index
    %c1_14 = arith.constant 1 : index
    %c0_15 = arith.constant 0 : index
    %c0_16 = arith.constant 0 : index
    %9 = vector.load %arg2[%c0_13, %c1_14, %c0_15, %c0_16] : memref<3x3x8x16xbf16, #tpu.memory_space<vmem>>, vector<1x1x8x16xbf16>
    %10 = vector.shape_cast %9 : vector<1x1x8x16xbf16> to vector<8x16xbf16>
    %cst_17 = arith.constant dense<0.000000e+00> : vector<8x72xf32>
    %11 = tpu.matmul %10, %8, %cst_17 {dimension_numbers = #tpu.dot_dimension_numbers<[1], [0], [0], [1], [0, 0, 1, 1], [], []>} : vector<8x16xbf16>, vector<16x72xbf16>, vector<8x72xf32> -> vector<8x72xf32>
    %12 = arith.addf %6, %11 : vector<8x72xf32>
    %c0_18 = arith.constant 0 : index
    %c0_19 = arith.constant 0 : index
    %c0_20 = arith.constant 0 : index
    %c0_21 = arith.constant 0 : index
    %c1_22 = arith.constant 1 : index
    %13 = vector.load %arg1[%c0_18, %c0_19, %c0_20, %c0_21, %c1_22] : memref<1x2x2x16x90xbf16, #tpu.memory_space<vmem>>, vector<1x1x1x16x72xbf16>
    %14 = vector.shape_cast %13 : vector<1x1x1x16x72xbf16> to vector<16x72xbf16>
    %c0_23 = arith.constant 0 : index
    %c2 = arith.constant 2 : index
    %c0_24 = arith.constant 0 : index
    %c0_25 = arith.constant 0 : index
    %15 = vector.load %arg2[%c0_23, %c2, %c0_24, %c0_25] : memref<3x3x8x16xbf16, #tpu.memory_space<vmem>>, vector<1x1x8x16xbf16>
    %16 = vector.shape_cast %15 : vector<1x1x8x16xbf16> to vector<8x16xbf16>
    %cst_26 = arith.constant dense<0.000000e+00> : vector<8x72xf32>
    %17 = tpu.matmul %16, %14, %cst_26 {dimension_numbers = #tpu.dot_dimension_numbers<[1], [0], [0], [1], [0, 0, 1, 1], [], []>} : vector<8x16xbf16>, vector<16x72xbf16>, vector<8x72xf32> -> vector<8x72xf32>
    %18 = arith.addf %12, %17 : vector<8x72xf32>
    %c0_27 = arith.constant 0 : index
    %c1_28 = arith.constant 1 : index
    %c0_29 = arith.constant 0 : index
    %c0_30 = arith.constant 0 : index
    %c0_31 = arith.constant 0 : index
    %19 = vector.load %arg1[%c0_27, %c1_28, %c0_29, %c0_30, %c0_31] : memref<1x2x2x16x90xbf16, #tpu.memory_space<vmem>>, vector<1x1x1x16x72xbf16>
    %20 = vector.shape_cast %19 : vector<1x1x1x16x72xbf16> to vector<16x72xbf16>
    %c1_32 = arith.constant 1 : index
    %c0_33 = arith.constant 0 : index
    %c0_34 = arith.constant 0 : index
    %c0_35 = arith.constant 0 : index
    %21 = vector.load %arg2[%c1_32, %c0_33, %c0_34, %c0_35] : memref<3x3x8x16xbf16, #tpu.memory_space<vmem>>, vector<1x1x8x16xbf16>
    %22 = vector.shape_cast %21 : vector<1x1x8x16xbf16> to vector<8x16xbf16>
    %cst_36 = arith.constant dense<0.000000e+00> : vector<8x72xf32>
    %23 = tpu.matmul %22, %20, %cst_36 {dimension_numbers = #tpu.dot_dimension_numbers<[1], [0], [0], [1], [0, 0, 1, 1], [], []>} : vector<8x16xbf16>, vector<16x72xbf16>, vector<8x72xf32> -> vector<8x72xf32>
    %24 = arith.addf %18, %23 : vector<8x72xf32>
    %c0_37 = arith.constant 0 : index
    %c1_38 = arith.constant 1 : index
    %c1_39 = arith.constant 1 : index
    %c0_40 = arith.constant 0 : index
    %c0_41 = arith.constant 0 : index
    %25 = vector.load %arg1[%c0_37, %c1_38, %c1_39, %c0_40, %c0_41] : memref<1x2x2x16x90xbf16, #tpu.memory_space<vmem>>, vector<1x1x1x16x72xbf16>
    %26 = vector.shape_cast %25 : vector<1x1x1x16x72xbf16> to vector<16x72xbf16>
    %c1_42 = arith.constant 1 : index
    %c1_43 = arith.constant 1 : index
    %c0_44 = arith.constant 0 : index
    %c0_45 = arith.constant 0 : index
    %27 = vector.load %arg2[%c1_42, %c1_43, %c0_44, %c0_45] : memref<3x3x8x16xbf16, #tpu.memory_space<vmem>>, vector<1x1x8x16xbf16>
    %28 = vector.shape_cast %27 : vector<1x1x8x16xbf16> to vector<8x16xbf16>
    %cst_46 = arith.constant dense<0.000000e+00> : vector<8x72xf32>
    %29 = tpu.matmul %28, %26, %cst_46 {dimension_numbers = #tpu.dot_dimension_numbers<[1], [0], [0], [1], [0, 0, 1, 1], [], []>} : vector<8x16xbf16>, vector<16x72xbf16>, vector<8x72xf32> -> vector<8x72xf32>
    %30 = arith.addf %24, %29 : vector<8x72xf32>
    %c0_47 = arith.constant 0 : index
    %c1_48 = arith.constant 1 : index
    %c0_49 = arith.constant 0 : index
    %c0_50 = arith.constant 0 : index
    %c1_51 = arith.constant 1 : index
    %31 = vector.load %arg1[%c0_47, %c1_48, %c0_49, %c0_50, %c1_51] : memref<1x2x2x16x90xbf16, #tpu.memory_space<vmem>>, vector<1x1x1x16x72xbf16>
    %32 = vector.shape_cast %31 : vector<1x1x1x16x72xbf16> to vector<16x72xbf16>
    %c1_52 = arith.constant 1 : index
    %c2_53 = arith.constant 2 : index
    %c0_54 = arith.constant 0 : index
    %c0_55 = arith.constant 0 : index
    %33 = vector.load %arg2[%c1_52, %c2_53, %c0_54, %c0_55] : memref<3x3x8x16xbf16, #tpu.memory_space<vmem>>, vector<1x1x8x16xbf16>
    %34 = vector.shape_cast %33 : vector<1x1x8x16xbf16> to vector<8x16xbf16>
    %cst_56 = arith.constant dense<0.000000e+00> : vector<8x72xf32>
    %35 = tpu.matmul %34, %32, %cst_56 {dimension_numbers = #tpu.dot_dimension_numbers<[1], [0], [0], [1], [0, 0, 1, 1], [], []>} : vector<8x16xbf16>, vector<16x72xbf16>, vector<8x72xf32> -> vector<8x72xf32>
    %36 = arith.addf %30, %35 : vector<8x72xf32>
    %c0_57 = arith.constant 0 : index
    %c0_58 = arith.constant 0 : index
    %c0_59 = arith.constant 0 : index
    %c0_60 = arith.constant 0 : index
    %c9 = arith.constant 9 : index
    %37 = vector.load %arg1[%c0_57, %c0_58, %c0_59, %c0_60, %c9] : memref<1x2x2x16x90xbf16, #tpu.memory_space<vmem>>, vector<1x1x1x16x72xbf16>
    %38 = vector.shape_cast %37 : vector<1x1x1x16x72xbf16> to vector<16x72xbf16>
    %c2_61 = arith.constant 2 : index
    %c0_62 = arith.constant 0 : index
    %c0_63 = arith.constant 0 : index
    %c0_64 = arith.constant 0 : index
    %39 = vector.load %arg2[%c2_61, %c0_62, %c0_63, %c0_64] : memref<3x3x8x16xbf16, #tpu.memory_space<vmem>>, vector<1x1x8x16xbf16>
    %40 = vector.shape_cast %39 : vector<1x1x8x16xbf16> to vector<8x16xbf16>
    %cst_65 = arith.constant dense<0.000000e+00> : vector<8x72xf32>
    %41 = tpu.matmul %40, %38, %cst_65 {dimension_numbers = #tpu.dot_dimension_numbers<[1], [0], [0], [1], [0, 0, 1, 1], [], []>} : vector<8x16xbf16>, vector<16x72xbf16>, vector<8x72xf32> -> vector<8x72xf32>
    %42 = arith.addf %36, %41 : vector<8x72xf32>
    %c0_66 = arith.constant 0 : index
    %c0_67 = arith.constant 0 : index
    %c1_68 = arith.constant 1 : index
    %c0_69 = arith.constant 0 : index
    %c9_70 = arith.constant 9 : index
    %43 = vector.load %arg1[%c0_66, %c0_67, %c1_68, %c0_69, %c9_70] : memref<1x2x2x16x90xbf16, #tpu.memory_space<vmem>>, vector<1x1x1x16x72xbf16>
    %44 = vector.shape_cast %43 : vector<1x1x1x16x72xbf16> to vector<16x72xbf16>
    %c2_71 = arith.constant 2 : index
    %c1_72 = arith.constant 1 : index
    %c0_73 = arith.constant 0 : index
    %c0_74 = arith.constant 0 : index
    %45 = vector.load %arg2[%c2_71, %c1_72, %c0_73, %c0_74] : memref<3x3x8x16xbf16, #tpu.memory_space<vmem>>, vector<1x1x8x16xbf16>
    %46 = vector.shape_cast %45 : vector<1x1x8x16xbf16> to vector<8x16xbf16>
    %cst_75 = arith.constant dense<0.000000e+00> : vector<8x72xf32>
    %47 = tpu.matmul %46, %44, %cst_75 {dimension_numbers = #tpu.dot_dimension_numbers<[1], [0], [0], [1], [0, 0, 1, 1], [], []>} : vector<8x16xbf16>, vector<16x72xbf16>, vector<8x72xf32> -> vector<8x72xf32>
    %48 = arith.addf %42, %47 : vector<8x72xf32>
    %c0_76 = arith.constant 0 : index
    %c0_77 = arith.constant 0 : index
    %c0_78 = arith.constant 0 : index
    %c0_79 = arith.constant 0 : index
    %c10 = arith.constant 10 : index
    %49 = vector.load %arg1[%c0_76, %c0_77, %c0_78, %c0_79, %c10] : memref<1x2x2x16x90xbf16, #tpu.memory_space<vmem>>, vector<1x1x1x16x72xbf16>
    %50 = vector.shape_cast %49 : vector<1x1x1x16x72xbf16> to vector<16x72xbf16>
    %c2_80 = arith.constant 2 : index
    %c2_81 = arith.constant 2 : index
    %c0_82 = arith.constant 0 : index
    %c0_83 = arith.constant 0 : index
    %51 = vector.load %arg2[%c2_80, %c2_81, %c0_82, %c0_83] : memref<3x3x8x16xbf16, #tpu.memory_space<vmem>>, vector<1x1x8x16xbf16>
    %52 = vector.shape_cast %51 : vector<1x1x8x16xbf16> to vector<8x16xbf16>
    %cst_84 = arith.constant dense<0.000000e+00> : vector<8x72xf32>
    %53 = tpu.matmul %52, %50, %cst_84 {dimension_numbers = #tpu.dot_dimension_numbers<[1], [0], [0], [1], [0, 0, 1, 1], [], []>} : vector<8x16xbf16>, vector<16x72xbf16>, vector<8x72xf32> -> vector<8x72xf32>
    %54 = arith.addf %48, %53 : vector<8x72xf32>
    %c0_85 = arith.constant 0 : index
    %c0_86 = arith.constant 0 : index
    %55 = vector.load %arg3[%c0_85, %c0_86] : memref<8x1xf32, #tpu.memory_space<vmem>>, vector<8x1xf32>
    %56 = vector.broadcast %55 : vector<8x1xf32> to vector<8x72xf32>
    %57 = arith.addf %54, %56 : vector<8x72xf32>
    %cst_87 = arith.constant 0.000000e+00 : f32
    %cst_88 = arith.constant 2.000000e+01 : f32
    %58 = vector.broadcast %cst_87 : f32 to vector<8x72xf32>
    %59 = arith.maximumf %58, %57 : vector<8x72xf32>
    %60 = vector.broadcast %cst_88 : f32 to vector<8x72xf32>
    %61 = arith.minimumf %60, %59 : vector<8x72xf32>
    %62 = arith.truncf %61 : vector<8x72xf32> to vector<8x72xbf16>
    %c0_89 = arith.constant 0 : index
    %c0_90 = arith.constant 0 : index
    %c0_91 = arith.constant 0 : index
    %63 = vector.load %arg4[%c0_89, %c0_90, %c0_91] : memref<1x8x72xbf16, #tpu.memory_space<vmem>>, vector<1x8x72xbf16>
    %64 = vector.shape_cast %63 : vector<1x8x72xbf16> to vector<8x72xbf16>
    %65 = vector.shape_cast %62 : vector<8x72xbf16> to vector<1x8x72xbf16>
    tpu.vector_store %arg4[%c0_89, %c0_90, %c0_91], %65 {strides = array<i32>} : memref<1x8x72xbf16, #tpu.memory_space<vmem>>, vector<1x8x72xbf16>,
    return
  }
  func.func @transform_0(%arg0: i32) -> (i32, i32, i32, i32, i32) {
    %c0_i32 = arith.constant 0 : i32
    %c0_i32_0 = arith.constant 0 : i32
    %c0_i32_1 = arith.constant 0 : i32
    %c0_i32_2 = arith.constant 0 : i32
    %c0_i32_3 = arith.constant 0 : i32
    return %arg0, %c0_i32, %c0_i32_0, %c0_i32_1, %c0_i32_2 : i32, i32, i32, i32, i32
  }
  func.func @transform_1(%arg0: i32) -> (i32, i32, i32, i32) {
    %c0_i32 = arith.constant 0 : i32
    %c0_i32_0 = arith.constant 0 : i32
    %c0_i32_1 = arith.constant 0 : i32
    %c0_i32_2 = arith.constant 0 : i32
    %c0_i32_3 = arith.constant 0 : i32
    return %c0_i32, %c0_i32_0, %c0_i32_1, %c0_i32_2 : i32, i32, i32, i32
  }
  func.func @transform_2(%arg0: i32) -> (i32, i32) {
    %c0_i32 = arith.constant 0 : i32
    %c0_i32_0 = arith.constant 0 : i32
    %c0_i32_1 = arith.constant 0 : i32
    return %c0_i32, %c0_i32_0 : i32, i32
  }
  func.func @transform_3(%arg0: i32) -> (i32, i32, i32) {
    %c0_i32 = arith.constant 0 : i32
    %c0_i32_0 = arith.constant 0 : i32
    %c0_i32_1 = arith.constant 0 : i32
    return %arg0, %c0_i32, %c0_i32_0 : i32, i32, i32
  }
}

module attributes {stable_mosaic.version = 11 : i64} {
  func.func @_fused_conv_hardtanh_kernel(%arg0: i32, %arg1: memref<1x2x1x16x60xbf16, #tpu.memory_space<vmem>>, %arg2: memref<3x3x16x16xbf16, #tpu.memory_space<vmem>>, %arg3: memref<16x1xf32, #tpu.memory_space<vmem>>, %arg4: memref<1x16x40xf32, #tpu.memory_space<vmem>>) attributes {dimension_semantics = [#tpu.dimension_semantics<parallel>], iteration_bounds = array<i64: 2>, scalar_prefetch = 0 : i64, scratch_operands = 0 : i64, tpu.core_type = #tpu.core_type<tc>, window_params = [{transform_indices = @transform_0, window_bounds = array<i64: 1, 2, 1, 16, 60>}, {pipeline_mode = #tpu.pipeline_mode<synchronous>, transform_indices = @transform_1, window_bounds = array<i64: 3, 3, 16, 16>}, {pipeline_mode = #tpu.pipeline_mode<synchronous>, transform_indices = @transform_2, window_bounds = array<i64: 16, 1>}, {transform_indices = @transform_3, window_bounds = array<i64: 1, 16, 40>}]} {
    %cst = arith.constant 0.000000e+00 : f32
    %0 = vector.broadcast %cst : f32 to vector<16x40xf32>
    %c0 = arith.constant 0 : index
    %c0_0 = arith.constant 0 : index
    %c0_1 = arith.constant 0 : index
    %c0_2 = arith.constant 0 : index
    %c0_3 = arith.constant 0 : index
    %1 = vector.load %arg1[%c0, %c0_0, %c0_1, %c0_2, %c0_3] : memref<1x2x1x16x60xbf16, #tpu.memory_space<vmem>>, vector<1x1x1x16x40xbf16>
    %2 = vector.shape_cast %1 : vector<1x1x1x16x40xbf16> to vector<16x40xbf16>
    %c0_4 = arith.constant 0 : index
    %c0_5 = arith.constant 0 : index
    %c0_6 = arith.constant 0 : index
    %c0_7 = arith.constant 0 : index
    %3 = vector.load %arg2[%c0_4, %c0_5, %c0_6, %c0_7] : memref<3x3x16x16xbf16, #tpu.memory_space<vmem>>, vector<1x1x16x16xbf16>
    %4 = vector.shape_cast %3 : vector<1x1x16x16xbf16> to vector<16x16xbf16>
    %cst_8 = arith.constant dense<0.000000e+00> : vector<16x40xf32>
    %5 = tpu.matmul %4, %2, %cst_8 {dimension_numbers = #tpu.dot_dimension_numbers<[1], [0], [0], [1], [0, 0, 1, 1], [], []>} : vector<16x16xbf16>, vector<16x40xbf16>, vector<16x40xf32> -> vector<16x40xf32>
    %6 = arith.addf %0, %5 : vector<16x40xf32>
    %c0_9 = arith.constant 0 : index
    %c0_10 = arith.constant 0 : index
    %c0_11 = arith.constant 0 : index
    %c0_12 = arith.constant 0 : index
    %c1 = arith.constant 1 : index
    %7 = vector.load %arg1[%c0_9, %c0_10, %c0_11, %c0_12, %c1] : memref<1x2x1x16x60xbf16, #tpu.memory_space<vmem>>, vector<1x1x1x16x40xbf16>
    %8 = vector.shape_cast %7 : vector<1x1x1x16x40xbf16> to vector<16x40xbf16>
    %c0_13 = arith.constant 0 : index
    %c1_14 = arith.constant 1 : index
    %c0_15 = arith.constant 0 : index
    %c0_16 = arith.constant 0 : index
    %9 = vector.load %arg2[%c0_13, %c1_14, %c0_15, %c0_16] : memref<3x3x16x16xbf16, #tpu.memory_space<vmem>>, vector<1x1x16x16xbf16>
    %10 = vector.shape_cast %9 : vector<1x1x16x16xbf16> to vector<16x16xbf16>
    %cst_17 = arith.constant dense<0.000000e+00> : vector<16x40xf32>
    %11 = tpu.matmul %10, %8, %cst_17 {dimension_numbers = #tpu.dot_dimension_numbers<[1], [0], [0], [1], [0, 0, 1, 1], [], []>} : vector<16x16xbf16>, vector<16x40xbf16>, vector<16x40xf32> -> vector<16x40xf32>
    %12 = arith.addf %6, %11 : vector<16x40xf32>
    %c0_18 = arith.constant 0 : index
    %c0_19 = arith.constant 0 : index
    %c0_20 = arith.constant 0 : index
    %c0_21 = arith.constant 0 : index
    %c2 = arith.constant 2 : index
    %13 = vector.load %arg1[%c0_18, %c0_19, %c0_20, %c0_21, %c2] : memref<1x2x1x16x60xbf16, #tpu.memory_space<vmem>>, vector<1x1x1x16x40xbf16>
    %14 = vector.shape_cast %13 : vector<1x1x1x16x40xbf16> to vector<16x40xbf16>
    %c0_22 = arith.constant 0 : index
    %c2_23 = arith.constant 2 : index
    %c0_24 = arith.constant 0 : index
    %c0_25 = arith.constant 0 : index
    %15 = vector.load %arg2[%c0_22, %c2_23, %c0_24, %c0_25] : memref<3x3x16x16xbf16, #tpu.memory_space<vmem>>, vector<1x1x16x16xbf16>
    %16 = vector.shape_cast %15 : vector<1x1x16x16xbf16> to vector<16x16xbf16>
    %cst_26 = arith.constant dense<0.000000e+00> : vector<16x40xf32>
    %17 = tpu.matmul %16, %14, %cst_26 {dimension_numbers = #tpu.dot_dimension_numbers<[1], [0], [0], [1], [0, 0, 1, 1], [], []>} : vector<16x16xbf16>, vector<16x40xbf16>, vector<16x40xf32> -> vector<16x40xf32>
    %18 = arith.addf %12, %17 : vector<16x40xf32>
    %c0_27 = arith.constant 0 : index
    %c1_28 = arith.constant 1 : index
    %c0_29 = arith.constant 0 : index
    %c0_30 = arith.constant 0 : index
    %c0_31 = arith.constant 0 : index
    %19 = vector.load %arg1[%c0_27, %c1_28, %c0_29, %c0_30, %c0_31] : memref<1x2x1x16x60xbf16, #tpu.memory_space<vmem>>, vector<1x1x1x16x40xbf16>
    %20 = vector.shape_cast %19 : vector<1x1x1x16x40xbf16> to vector<16x40xbf16>
    %c1_32 = arith.constant 1 : index
    %c0_33 = arith.constant 0 : index
    %c0_34 = arith.constant 0 : index
    %c0_35 = arith.constant 0 : index
    %21 = vector.load %arg2[%c1_32, %c0_33, %c0_34, %c0_35] : memref<3x3x16x16xbf16, #tpu.memory_space<vmem>>, vector<1x1x16x16xbf16>
    %22 = vector.shape_cast %21 : vector<1x1x16x16xbf16> to vector<16x16xbf16>
    %cst_36 = arith.constant dense<0.000000e+00> : vector<16x40xf32>
    %23 = tpu.matmul %22, %20, %cst_36 {dimension_numbers = #tpu.dot_dimension_numbers<[1], [0], [0], [1], [0, 0, 1, 1], [], []>} : vector<16x16xbf16>, vector<16x40xbf16>, vector<16x40xf32> -> vector<16x40xf32>
    %24 = arith.addf %18, %23 : vector<16x40xf32>
    %c0_37 = arith.constant 0 : index
    %c1_38 = arith.constant 1 : index
    %c0_39 = arith.constant 0 : index
    %c0_40 = arith.constant 0 : index
    %c1_41 = arith.constant 1 : index
    %25 = vector.load %arg1[%c0_37, %c1_38, %c0_39, %c0_40, %c1_41] : memref<1x2x1x16x60xbf16, #tpu.memory_space<vmem>>, vector<1x1x1x16x40xbf16>
    %26 = vector.shape_cast %25 : vector<1x1x1x16x40xbf16> to vector<16x40xbf16>
    %c1_42 = arith.constant 1 : index
    %c1_43 = arith.constant 1 : index
    %c0_44 = arith.constant 0 : index
    %c0_45 = arith.constant 0 : index
    %27 = vector.load %arg2[%c1_42, %c1_43, %c0_44, %c0_45] : memref<3x3x16x16xbf16, #tpu.memory_space<vmem>>, vector<1x1x16x16xbf16>
    %28 = vector.shape_cast %27 : vector<1x1x16x16xbf16> to vector<16x16xbf16>
    %cst_46 = arith.constant dense<0.000000e+00> : vector<16x40xf32>
    %29 = tpu.matmul %28, %26, %cst_46 {dimension_numbers = #tpu.dot_dimension_numbers<[1], [0], [0], [1], [0, 0, 1, 1], [], []>} : vector<16x16xbf16>, vector<16x40xbf16>, vector<16x40xf32> -> vector<16x40xf32>
    %30 = arith.addf %24, %29 : vector<16x40xf32>
    %c0_47 = arith.constant 0 : index
    %c1_48 = arith.constant 1 : index
    %c0_49 = arith.constant 0 : index
    %c0_50 = arith.constant 0 : index
    %c2_51 = arith.constant 2 : index
    %31 = vector.load %arg1[%c0_47, %c1_48, %c0_49, %c0_50, %c2_51] : memref<1x2x1x16x60xbf16, #tpu.memory_space<vmem>>, vector<1x1x1x16x40xbf16>
    %32 = vector.shape_cast %31 : vector<1x1x1x16x40xbf16> to vector<16x40xbf16>
    %c1_52 = arith.constant 1 : index
    %c2_53 = arith.constant 2 : index
    %c0_54 = arith.constant 0 : index
    %c0_55 = arith.constant 0 : index
    %33 = vector.load %arg2[%c1_52, %c2_53, %c0_54, %c0_55] : memref<3x3x16x16xbf16, #tpu.memory_space<vmem>>, vector<1x1x16x16xbf16>
    %34 = vector.shape_cast %33 : vector<1x1x16x16xbf16> to vector<16x16xbf16>
    %cst_56 = arith.constant dense<0.000000e+00> : vector<16x40xf32>
    %35 = tpu.matmul %34, %32, %cst_56 {dimension_numbers = #tpu.dot_dimension_numbers<[1], [0], [0], [1], [0, 0, 1, 1], [], []>} : vector<16x16xbf16>, vector<16x40xbf16>, vector<16x40xf32> -> vector<16x40xf32>
    %36 = arith.addf %30, %35 : vector<16x40xf32>
    %c0_57 = arith.constant 0 : index
    %c0_58 = arith.constant 0 : index
    %c0_59 = arith.constant 0 : index
    %c0_60 = arith.constant 0 : index
    %c10 = arith.constant 10 : index
    %37 = vector.load %arg1[%c0_57, %c0_58, %c0_59, %c0_60, %c10] : memref<1x2x1x16x60xbf16, #tpu.memory_space<vmem>>, vector<1x1x1x16x40xbf16>
    %38 = vector.shape_cast %37 : vector<1x1x1x16x40xbf16> to vector<16x40xbf16>
    %c2_61 = arith.constant 2 : index
    %c0_62 = arith.constant 0 : index
    %c0_63 = arith.constant 0 : index
    %c0_64 = arith.constant 0 : index
    %39 = vector.load %arg2[%c2_61, %c0_62, %c0_63, %c0_64] : memref<3x3x16x16xbf16, #tpu.memory_space<vmem>>, vector<1x1x16x16xbf16>
    %40 = vector.shape_cast %39 : vector<1x1x16x16xbf16> to vector<16x16xbf16>
    %cst_65 = arith.constant dense<0.000000e+00> : vector<16x40xf32>
    %41 = tpu.matmul %40, %38, %cst_65 {dimension_numbers = #tpu.dot_dimension_numbers<[1], [0], [0], [1], [0, 0, 1, 1], [], []>} : vector<16x16xbf16>, vector<16x40xbf16>, vector<16x40xf32> -> vector<16x40xf32>
    %42 = arith.addf %36, %41 : vector<16x40xf32>
    %c0_66 = arith.constant 0 : index
    %c0_67 = arith.constant 0 : index
    %c0_68 = arith.constant 0 : index
    %c0_69 = arith.constant 0 : index
    %c11 = arith.constant 11 : index
    %43 = vector.load %arg1[%c0_66, %c0_67, %c0_68, %c0_69, %c11] : memref<1x2x1x16x60xbf16, #tpu.memory_space<vmem>>, vector<1x1x1x16x40xbf16>
    %44 = vector.shape_cast %43 : vector<1x1x1x16x40xbf16> to vector<16x40xbf16>
    %c2_70 = arith.constant 2 : index
    %c1_71 = arith.constant 1 : index
    %c0_72 = arith.constant 0 : index
    %c0_73 = arith.constant 0 : index
    %45 = vector.load %arg2[%c2_70, %c1_71, %c0_72, %c0_73] : memref<3x3x16x16xbf16, #tpu.memory_space<vmem>>, vector<1x1x16x16xbf16>
    %46 = vector.shape_cast %45 : vector<1x1x16x16xbf16> to vector<16x16xbf16>
    %cst_74 = arith.constant dense<0.000000e+00> : vector<16x40xf32>
    %47 = tpu.matmul %46, %44, %cst_74 {dimension_numbers = #tpu.dot_dimension_numbers<[1], [0], [0], [1], [0, 0, 1, 1], [], []>} : vector<16x16xbf16>, vector<16x40xbf16>, vector<16x40xf32> -> vector<16x40xf32>
    %48 = arith.addf %42, %47 : vector<16x40xf32>
    %c0_75 = arith.constant 0 : index
    %c0_76 = arith.constant 0 : index
    %c0_77 = arith.constant 0 : index
    %c0_78 = arith.constant 0 : index
    %c12 = arith.constant 12 : index
    %49 = vector.load %arg1[%c0_75, %c0_76, %c0_77, %c0_78, %c12] : memref<1x2x1x16x60xbf16, #tpu.memory_space<vmem>>, vector<1x1x1x16x40xbf16>
    %50 = vector.shape_cast %49 : vector<1x1x1x16x40xbf16> to vector<16x40xbf16>
    %c2_79 = arith.constant 2 : index
    %c2_80 = arith.constant 2 : index
    %c0_81 = arith.constant 0 : index
    %c0_82 = arith.constant 0 : index
    %51 = vector.load %arg2[%c2_79, %c2_80, %c0_81, %c0_82] : memref<3x3x16x16xbf16, #tpu.memory_space<vmem>>, vector<1x1x16x16xbf16>
    %52 = vector.shape_cast %51 : vector<1x1x16x16xbf16> to vector<16x16xbf16>
    %cst_83 = arith.constant dense<0.000000e+00> : vector<16x40xf32>
    %53 = tpu.matmul %52, %50, %cst_83 {dimension_numbers = #tpu.dot_dimension_numbers<[1], [0], [0], [1], [0, 0, 1, 1], [], []>} : vector<16x16xbf16>, vector<16x40xbf16>, vector<16x40xf32> -> vector<16x40xf32>
    %54 = arith.addf %48, %53 : vector<16x40xf32>
    %c0_84 = arith.constant 0 : index
    %c0_85 = arith.constant 0 : index
    %55 = vector.load %arg3[%c0_84, %c0_85] : memref<16x1xf32, #tpu.memory_space<vmem>>, vector<16x1xf32>
    %56 = vector.broadcast %55 : vector<16x1xf32> to vector<16x40xf32>
    %57 = arith.addf %54, %56 : vector<16x40xf32>
    %cst_86 = arith.constant 0.000000e+00 : f32
    %cst_87 = arith.constant 2.000000e+01 : f32
    %58 = vector.broadcast %cst_86 : f32 to vector<16x40xf32>
    %59 = arith.maximumf %58, %57 : vector<16x40xf32>
    %60 = vector.broadcast %cst_87 : f32 to vector<16x40xf32>
    %61 = arith.minimumf %60, %59 : vector<16x40xf32>
    %c0_88 = arith.constant 0 : index
    %c0_89 = arith.constant 0 : index
    %c0_90 = arith.constant 0 : index
    %62 = vector.load %arg4[%c0_88, %c0_89, %c0_90] : memref<1x16x40xf32, #tpu.memory_space<vmem>>, vector<1x16x40xf32>
    %63 = vector.shape_cast %62 : vector<1x16x40xf32> to vector<16x40xf32>
    %64 = vector.shape_cast %61 : vector<16x40xf32> to vector<1x16x40xf32>
    tpu.vector_store %arg4[%c0_88, %c0_89, %c0_90], %64 {strides = array<i32>} : memref<1x16x40xf32, #tpu.memory_space<vmem>>, vector<1x16x40xf32>,
    return
  }
  func.func @transform_0(%arg0: i32) -> (i32, i32, i32, i32, i32) {
    %c0_i32 = arith.constant 0 : i32
    %c0_i32_0 = arith.constant 0 : i32
    %c0_i32_1 = arith.constant 0 : i32
    %c0_i32_2 = arith.constant 0 : i32
    %c0_i32_3 = arith.constant 0 : i32
    return %arg0, %c0_i32, %c0_i32_0, %c0_i32_1, %c0_i32_2 : i32, i32, i32, i32, i32
  }
  func.func @transform_1(%arg0: i32) -> (i32, i32, i32, i32) {
    %c0_i32 = arith.constant 0 : i32
    %c0_i32_0 = arith.constant 0 : i32
    %c0_i32_1 = arith.constant 0 : i32
    %c0_i32_2 = arith.constant 0 : i32
    %c0_i32_3 = arith.constant 0 : i32
    return %c0_i32, %c0_i32_0, %c0_i32_1, %c0_i32_2 : i32, i32, i32, i32
  }
  func.func @transform_2(%arg0: i32) -> (i32, i32) {
    %c0_i32 = arith.constant 0 : i32
    %c0_i32_0 = arith.constant 0 : i32
    %c0_i32_1 = arith.constant 0 : i32
    return %c0_i32, %c0_i32_0 : i32, i32
  }
  func.func @transform_3(%arg0: i32) -> (i32, i32, i32) {
    %c0_i32 = arith.constant 0 : i32
    %c0_i32_0 = arith.constant 0 : i32
    %c0_i32_1 = arith.constant 0 : i32
    return %arg0, %c0_i32, %c0_i32_0 : i32, i32, i32
  }
}

</mosaic_0001>

<bundles_post_ra>
// kernel: _convolutions_forward_jit.2
= control target key start
LH: loop header
LB: loop body
LE: loop exit
PB: predicated region body
PF: predicated region fallthrough
CT: control target
= control target key end

     0   :  { %s861_s12 = smov 0   ;;  %s954_s0 = inlined_call_operand.vmem [shape: bf16[2,2,2,16,90], index: 0, kind: input, shape index: {}]   ;;  %s955_s1 = inlined_call_operand.vmem [shape: bf16[3,3,8,16], index: 1, kind: input, shape index: {}]   ;;  %s956_s2 = inlined_call_operand.vmem [shape: f32[8,1], index: 2, kind: input, shape index: {}]   ;;  %s957_s3 = inlined_call_operand.vmem [shape: bf16[2,8,72], index: 3, kind: output, shape index: {}]  }
   0x1 LB: > { %s697_s13 = sadd.s32 4294967295, %s833_s12   ;;  %p701_p0 = scmp.ge.s32.totalorder %s833_s12, 1  ;;  %s833_s12 = sphi %s861_s12, %s13_s12  }
   0x2   : > { %p137_p1 = scmp.lt.s32.totalorder %s833_s12, 3 }
   0x4   : > { %p138_p2 = pnand %p701_p0, %p137_p1 }
   0x5   : > { %p160_p3 = scmp.lt.s32.totalorder (!%p138_p2), %s697_s13, 1  ;;  %s837_s18 = smov (!%p138_p2), 127  }
   0x6   : > { %141 = sbr.rel (%p138_p2) target bundleno = 361 (0x169), region = 32  ;;  %s838_s19 = smov (!%p138_p2), 119  }
   0x7   : > { %s839_s24 = smov (!%p138_p2), 118  }
   0xb   : > { %v835_v0 = vmov 0.0   ;;  %vm836_vm0 = vmmov 0   ;;  %s959_s13 = smov (!%p160_p3, %s697_s13), 1  ;;  %v172_v4 = vld [vmem:[%s955_s1] sm:$0xf]  ;;  %vm184_vm1 = vcmask 130048  }
   0xc   : > { %753 = vmatprep.subr.bf16.mxu0 %v835_v0  ;;  %755 = vmatprep.mubr.msk.bf16.mxu0 %vm836_vm0, %v835_v0  ;;  %s734_s14 = sshll.u32 %s959_s13, 5  ;;  %v707_v5 = vld [vmem:[%s955_s1 + $0x4] sm:$0xf]  ;;  %v716_v6 = vld [vmem:[%s955_s1 + $0xc] sm:$0xf]  ;;  %v840_v8 = vmov 0  }
   0xd   : > { %759 = vmatprep.subr.bf16.mxu1 %v835_v0  ;;  %761 = vmatprep.mubr.msk.bf16.mxu1 %vm836_vm0, %v835_v0  ;;  %s881_s17 = scalar_lea.vmem %s954_s0, %s734_s14  ;;  %v632_v7 = vld [vmem:[%s956_s2] sm:$0xff]  ;;  %v712_v10 = vld [vmem:[%s955_s1 + $0x8] sm:$0xf]  ;;  %v724_v14 = vld [vmem:[%s955_s1 + $0x14] sm:$0xf]  ;;  %s704_s16 = sshll.u32 %s959_s13, 2 }
   0xe   : > { %v823_v1 = vld [vmem:[%s881_s17] sm:$0xff]   ;;  %v824_v2 = vld [vmem:[%s881_s17 + $0x10] sm:$0xff]   ;;  %v825_v3 = vld [vmem:[%s881_s17 + $0x8] sm:$0xff]   ;;  %821 = vset.pattern.permute.xlu1 %v840_v8  ;;  %822 = vset.pattern.permute.xlu0 %v840_v8  ;;  %vm642_vm2 = vcmask 584704  }
   0xf   : > { %279 = vrot.lane.b32.xlu0 %v823_v1, %s837_s18  ;;  %487 = vrot.lane.b32.xlu1 %v823_v1, %s838_s19  ;;  %v826_v11 = vld [vmem:[%s881_s17 + $0x18] sm:$0xff]   ;;  %v721_v16 = vld [vmem:[%s955_s1 + $0x10] sm:$0xf] }
  0x10   : > { %760 = vmatpush3.bf16.msra.mxu1 %v823_v1  ;;  %754 = vmatpush3.bf16.msra.mxu0 %v825_v3  ;;  %v728_v17 = vld [vmem:[%s955_s1 + $0x1c] sm:$0xf]  ;;  %v726_v18 = vld [vmem:[%s955_s1 + $0x18] sm:$0xf]  ;;  %v730_v20 = vld [vmem:[%s955_s1 + $0x20] sm:$0xf] }
  0x11   : > { %771 = vmatprep.subr.bf16.mxu1 %v835_v0  ;;  %765 = vmatprep.subr.bf16.mxu0 %v835_v0 }
  0x13   : > { %438 = vrot.lane.b32.xlu0 %v824_v2, %s837_s18  ;;  %536 = vrot.lane.b32.xlu1 %v825_v3, %s838_s19  ;;  %s168_s19 = scalar_lea.vmem %s957_s3, %s704_s16 }
  0x14   : > { %762 = vmatmul.mubr.msk.bf16.vlgmr.msra.gmra.mxu1 %vm184_vm1, %v172_v4  ;;  %756 = vmatmul.mubr.msk.bf16.vlgmr.msra.gmra.mxu0 %vm184_vm1, %v707_v5 }
  0x15   : > { %772 = vmatpush3.bf16.msra.mxu1 %v824_v2  ;;  %767 = vmatprep.mubr.msk.bf16.mxu0 %vm836_vm0, %v835_v0 }
  0x16   : > { %773 = vmatprep.mubr.msk.bf16.mxu1 %vm836_vm0, %v835_v0  ;;  %783 = vmatprep.subr.bf16.mxu1 %v835_v0 }
  0x17   : > { %585 = vrot.lane.b32.xlu0 %v823_v1, %s839_s24  ;;  %635 = vperm.xlu1 %821, %v632_v7  }
  0x1c   : > { %774 = vmatmul.mubr.msk.bf16.vlgmr.msra.gmra.mxu1 %vm184_vm1, %v716_v6 }
  0x1d   : > { %785 = vmatprep.mubr.msk.bf16.mxu1 %vm836_vm0, %v835_v0 }
  0x81   : > { %v280_v9 = vpop.permute.xlu0 %279  ;;  %v488_v12 = vpop.permute.xlu1 %487 }
  0x82   : > { %766 = vmatpush3.bf16.msra.mxu0 %v280_v9 }
  0x83   : > { %777 = vmatprep.subr.bf16.mxu0 %v835_v0 }
  0x85   : > { %768 = vmatmul.mubr.msk.bf16.vlgmr.msra.gmra.mxu0 %vm184_vm1, %v712_v10  ;;  %v439_v13 = vpop.permute.xlu0 %438  ;;  %v537_v15 = vpop.permute.xlu1 %536 }
  0x86   : > { %778 = vmatpush3.bf16.msra.mxu0 %v826_v11  ;;  %779 = vmatprep.mubr.msk.bf16.mxu0 %vm836_vm0, %v835_v0 }
  0x87   : > { %784 = vmatpush3.bf16.msra.mxu1 %v439_v13  ;;  %789 = vmatprep.subr.bf16.mxu0 %v835_v0 }
  0x88   : > { %795 = vmatprep.subr.bf16.mxu1 %v835_v0 }
  0x89   : > { %v586_v19 = vpop.permute.xlu0 %585 }
  0x8a   : > { %786 = vmatmul.mubr.msk.bf16.vlgmr.msra.gmra.mxu1 %vm184_vm1, %v724_v14 }
  0x8b   : > { %796 = vmatpush3.bf16.msra.mxu1 %v537_v15  ;;  %797 = vmatprep.mubr.msk.bf16.mxu1 %vm836_vm0, %v835_v0 }
  0x8d   : > { %780 = vmatmul.mubr.msk.bf16.vlgmr.msra.gmra.mxu0 %vm184_vm1, %v721_v16 }
  0x8e   : > { %790 = vmatpush3.bf16.msra.mxu0 %v488_v12  ;;  %791 = vmatprep.mubr.msk.bf16.mxu0 %vm836_vm0, %v835_v0 }
  0x8f   : > { %801 = vmatprep.subr.bf16.mxu0 %v835_v0 }
  0x92   : > { %798 = vmatmul.mubr.msk.bf16.vlgmr.msra.gmra.mxu1 %vm184_vm1, %v728_v17  ;;  %v636_v61 = vpop.permute.xlu1 %635 }
  0x95   : > { %792 = vmatmul.mubr.msk.bf16.vlgmr.msra.gmra.mxu0 %vm184_vm1, %v726_v18 }
  0x96   : > { %802 = vmatpush3.bf16.msra.mxu0 %v586_v19  ;;  %803 = vmatprep.mubr.msk.bf16.mxu0 %vm836_vm0, %v835_v0 }
  0x9d   : > { %804 = vmatmul.mubr.msk.bf16.vlgmr.msra.gmra.mxu0 %vm184_vm1, %v730_v20 }
  0xd4   : > { %v271_v21 = vpop.f32.mrf.mxu1  ;;  %v222_v22 = vpop.f32.mrf.mxu0 }
  0xd5   : > { %v272_v23 = vadd.f32 %v271_v21, %v222_v22 }
  0xd6   : > { %v763_v24 = vpop.f32.mrf.mxu1  ;;  %v757_v25 = vpop.f32.mrf.mxu0 }
  0xd8   : > { %v274_v26 = vpop.f32.mrf.mxu1  ;;  %v225_v27 = vpop.f32.mrf.mxu0 }
  0xda   : > { %v764_v28 = vpop.f32.mrf.mxu1  ;;  %v758_v29 = vpop.f32.mrf.mxu0 }
  0xdc   : > { %v374_v30 = vpop.f32.mrf.mxu1 }
  0xde   : > { %v775_v31 = vpop.f32.mrf.mxu1 }
  0xe0   : > { %v377_v32 = vpop.f32.mrf.mxu1 }
  0xe2   : > { %v776_v33 = vpop.f32.mrf.mxu1 }
 0x145   : > { %v319_v34 = vpop.f32.mrf.mxu0 }
 0x146   : > { %v325_v39 = vadd.f32 %v319_v34, %v272_v23 }
 0x147   : > { %v769_v35 = vpop.f32.mrf.mxu0 }
 0x148   : > { %v380_v44 = vadd.f32 %v374_v30, %v325_v39 }
 0x149   : > { %v322_v36 = vpop.f32.mrf.mxu0 }
 0x14a   : > { %v478_v37 = vpop.f32.mrf.mxu1 }
 0x14b   : > { %v770_v38 = vpop.f32.mrf.mxu0 }
 0x14c   : > { %v787_v40 = vpop.f32.mrf.mxu1 }
 0x14d   : > { %v429_v41 = vpop.f32.mrf.mxu0 }
 0x14e   : > { %v481_v42 = vpop.f32.mrf.mxu1  ;;  %v435_v47 = vadd.f32 %v429_v41, %v380_v44 }
 0x14f   : > { %v781_v43 = vpop.f32.mrf.mxu0 }
 0x150   : > { %v788_v45 = vpop.f32.mrf.mxu1  ;;  %v484_v52 = vadd.f32 %v478_v37, %v435_v47 }
 0x151   : > { %v432_v46 = vpop.f32.mrf.mxu0 }
 0x152   : > { %v576_v48 = vpop.f32.mrf.mxu1 }
 0x153   : > { %v782_v49 = vpop.f32.mrf.mxu0 }
 0x154   : > { %v799_v50 = vpop.f32.mrf.mxu1 }
 0x155   : > { %v527_v51 = vpop.f32.mrf.mxu0 }
 0x156   : > { %v579_v53 = vpop.f32.mrf.mxu1  ;;  %v533_v55 = vadd.f32 %v527_v51, %v484_v52 }
 0x157   : > { %v793_v54 = vpop.f32.mrf.mxu0 }
 0x158   : > { %v800_v56 = vpop.f32.mrf.mxu1  ;;  %v582_v59 = vadd.f32 %v576_v48, %v533_v55 }
 0x159   : > { %v530_v57 = vpop.f32.mrf.mxu0 }
 0x15b   : > { %v794_v58 = vpop.f32.mrf.mxu0 }
 0x15d   : > { %v625_v60 = vpop.f32.mrf.mxu0 }
 0x15e   : > { %v631_v62 = vadd.f32 %v625_v60, %v582_v59 }
 0x15f   : > { %v805_v63 = vpop.f32.mrf.mxu0 }
 0x160   : > { %v638_v0 = vadd.f32 %v636_v61, %v631_v62 }
 0x161   : > { %v628_v1 = vpop.f32.mrf.mxu0 }
 0x162   : > { %v639_v2 = vmax.f32 %v638_v0, 0.0 }
 0x163   : > { %v806_v3 = vpop.f32.mrf.mxu0 }
 0x164   : > { %v640_v4 = vmin.f32 %v639_v2, 20.0 }
 0x166   : > { %v641_v5 = vpack.c.bf16 %v640_v4, %v640_v4 }
 0x168   : > { %643 = vst.msk [vmem:[%s168_s19] sm:$0xf] %vm642_vm2, %v641_v5 }
 0x169 PF: > { %s13_s12 = sadd.s32 1, %s833_s12  }
 0x16a   : > { %p10_p4 = scmp.ge.s32.totalorder %s13_s12, 4  }
 0x16c   :  { %12 = sbr.rel (!%p10_p4) target bundleno = 1 (0x1), region = 73 }

// kernel: _convolutions_forward_jit.3
= control target key start
LH: loop header
LB: loop body
LE: loop exit
PB: predicated region body
PF: predicated region fallthrough
CT: control target
= control target key end

     0   :  { %s956_s12 = smov 0   ;;  %s1049_s0 = inlined_call_operand.vmem [shape: bf16[2,2,1,16,60], index: 0, kind: input, shape index: {}]   ;;  %s1050_s1 = inlined_call_operand.vmem [shape: bf16[3,3,16,16], index: 1, kind: input, shape index: {}]   ;;  %s1051_s2 = inlined_call_operand.vmem [shape: f32[16,1], index: 2, kind: input, shape index: {}]   ;;  %s1052_s3 = inlined_call_operand.vmem [shape: f32[2,16,40], index: 3, kind: output, shape index: {}]  }
   0x1 LB: > { %s768_s13 = sadd.s32 4294967295, %s926_s12   ;;  %p772_p0 = scmp.ge.s32.totalorder %s926_s12, 1  ;;  %s926_s12 = sphi %s956_s12, %s13_s12  }
   0x2   : > { %p137_p1 = scmp.lt.s32.totalorder %s926_s12, 3 }
   0x4   : > { %p138_p2 = pnand %p772_p0, %p137_p1 }
   0x5   : > { %p161_p3 = scmp.lt.s32.totalorder (!%p138_p2), %s768_s13, 1  ;;  %s930_s20 = smov (!%p138_p2), 127  }
   0x6   : > { %141 = sbr.rel (%p138_p2) target bundleno = 371 (0x173), region = 32  ;;  %s931_s21 = smov (!%p138_p2), 126  }
   0x7   : > { %s932_s24 = smov (!%p138_p2), 118   ;;  %s933_s25 = smov (!%p138_p2), 117  }
   0x8   : > { %s934_s26 = smov (!%p138_p2), 116  }
   0xb   : > { %v928_v0 = vmov 0.0   ;;  %s1054_s13 = smov (!%p161_p3, %s768_s13), 1  ;;  %vm929_vm0 = vmmov 0   ;;  %v912_v1 = vld [vmem:[%s1050_s1] sm:$0xff]   ;;  %vm192_vm1 = vcmask 130048   ;;  %v914_v4 = vld [vmem:[%s1050_s1 + $0x18] sm:$0xff]  }
   0xc   : > { %837 = vmatprep.subr.bf16.mxu0 %v928_v0  ;;  %843 = vmatprep.subr.bf16.mxu1 %v928_v0  ;;  %s817_s14 = sshll.u32 %s1054_s13, 4  ;;  %v692_v5 = vld [vmem:[%s1051_s2] sm:$0xff]  ;;  %v693_v6 = vld [vmem:[%s1051_s2 + $0x8] sm:$0xff]  ;;  %v935_v7 = vmov 0   ;;  %v913_v14 = vld [vmem:[%s1050_s1 + $0x10] sm:$0xff]   ;;  %vm710_vm2 = vcmask 326656  }
   0xd   : > { %839 = vmatprep.mubr.msk.bf16.mxu0 %vm929_vm0, %v928_v0  ;;  %845 = vmatprep.mubr.msk.bf16.mxu1 %vm929_vm0, %v928_v0  ;;  %s165_s17 = scalar_lea.vmem %s1049_s0, %s817_s14  ;;  %v911_v9 = vld [vmem:[%s1050_s1 + $0x8] sm:$0xff]   ;;  %v918_v16 = vld [vmem:[%s1050_s1 + $0x38] sm:$0xff]   ;;  %v915_v17 = vld [vmem:[%s1050_s1 + $0x20] sm:$0xff]   ;;  %s170_s23 = scalar_lea.vmem %s1052_s3, %s817_s14 }
   0xe   : > { %v909_v2 = vld [vmem:[%s165_s17] sm:$0xff]   ;;  %v910_v3 = vld [vmem:[%s165_s17 + $0x8] sm:$0xff]   ;;  %907 = vset.pattern.permute.xlu1 %v935_v7  ;;  %908 = vset.pattern.permute.xlu0 %v935_v7  ;;  %v917_v19 = vld [vmem:[%s1050_s1 + $0x30] sm:$0xff]  }
   0xf   : > { %189 = vrot.lane.b32.xlu0 %v909_v2, %s930_s20  ;;  %844 = vmatpush3.bf16.msra.mxu1 %v909_v2  ;;  %v916_v13 = vld [vmem:[%s1050_s1 + $0x28] sm:$0xff]   ;;  %v919_v21 = vld [vmem:[%s1050_s1 + $0x40] sm:$0xff]  }
  0x10   : > { %415 = vrot.lane.b32.xlu1 %v910_v3, %s930_s20  ;;  %855 = vmatprep.subr.bf16.mxu1 %v928_v0 }
  0x12   : > { %846 = vmatmul.mubr.msk.bf16.vlgmr.msra.gmra.mxu1 %vm192_vm1, %v912_v1 }
  0x13   : > { %295 = vrot.lane.b32.xlu0 %v909_v2, %s931_s21  ;;  %856 = vmatpush3.bf16.msra.mxu1 %v910_v3 }
  0x14   : > { %472 = vrot.lane.b32.xlu1 %v910_v3, %s931_s21  ;;  %857 = vmatprep.mubr.msk.bf16.mxu1 %vm929_vm0, %v928_v0 }
  0x15   : > { %867 = vmatprep.subr.bf16.mxu1 %v928_v0 }
  0x17   : > { %529 = vrot.lane.b32.xlu0 %v909_v2, %s932_s24 }
  0x18   : > { %586 = vrot.lane.b32.xlu1 %v909_v2, %s933_s25 }
  0x1a   : > { %858 = vmatmul.mubr.msk.bf16.vlgmr.msra.gmra.mxu1 %vm192_vm1, %v914_v4 }
  0x1b   : > { %643 = vrot.lane.b32.xlu0 %v909_v2, %s934_s26  ;;  %869 = vmatprep.mubr.msk.bf16.mxu1 %vm929_vm0, %v928_v0 }
  0x1c   : > { %696 = vperm.xlu1 %907, %v692_v5  }
  0x1f   : > { %701 = vperm.xlu0 %908, %v693_v6  }
  0x81   : > { %v190_v8 = vpop.permute.xlu0 %189 }
  0x82   : > { %838 = vmatpush3.bf16.msra.mxu0 %v190_v8  ;;  %v416_v10 = vpop.permute.xlu1 %415 }
  0x83   : > { %849 = vmatprep.subr.bf16.mxu0 %v928_v0 }
  0x85   : > { %840 = vmatmul.mubr.msk.bf16.vlgmr.msra.gmra.mxu0 %vm192_vm1, %v911_v9  ;;  %v296_v11 = vpop.permute.xlu0 %295 }
  0x86   : > { %850 = vmatpush3.bf16.msra.mxu0 %v296_v11  ;;  %851 = vmatprep.mubr.msk.bf16.mxu0 %vm929_vm0, %v928_v0  ;;  %v473_v12 = vpop.permute.xlu1 %472 }
  0x87   : > { %861 = vmatprep.subr.bf16.mxu0 %v928_v0  ;;  %868 = vmatpush3.bf16.msra.mxu1 %v473_v12 }
  0x88   : > { %879 = vmatprep.subr.bf16.mxu1 %v928_v0 }
  0x89   : > { %v530_v18 = vpop.permute.xlu0 %529 }
  0x8a   : > { %870 = vmatmul.mubr.msk.bf16.vlgmr.msra.gmra.mxu1 %vm192_vm1, %v916_v13  ;;  %v587_v15 = vpop.permute.xlu1 %586 }
  0x8b   : > { %880 = vmatpush3.bf16.msra.mxu1 %v587_v15  ;;  %881 = vmatprep.mubr.msk.bf16.mxu1 %vm929_vm0, %v928_v0 }
  0x8d   : > { %852 = vmatmul.mubr.msk.bf16.vlgmr.msra.gmra.mxu0 %vm192_vm1, %v913_v14  ;;  %v644_v20 = vpop.permute.xlu0 %643 }
  0x8e   : > { %862 = vmatpush3.bf16.msra.mxu0 %v416_v10  ;;  %863 = vmatprep.mubr.msk.bf16.mxu0 %vm929_vm0, %v928_v0 }
  0x8f   : > { %873 = vmatprep.subr.bf16.mxu0 %v928_v0 }
  0x92   : > { %882 = vmatmul.mubr.msk.bf16.vlgmr.msra.gmra.mxu1 %vm192_vm1, %v918_v16 }
  0x95   : > { %864 = vmatmul.mubr.msk.bf16.vlgmr.msra.gmra.mxu0 %vm192_vm1, %v915_v17 }
  0x96   : > { %874 = vmatpush3.bf16.msra.mxu0 %v530_v18  ;;  %875 = vmatprep.mubr.msk.bf16.mxu0 %vm929_vm0, %v928_v0 }
  0x97   : > { %885 = vmatprep.subr.bf16.mxu0 %v928_v0  ;;  %v697_v4 = vpop.permute.xlu1 %696 }
  0x9a   : > { %v702_v10 = vpop.permute.xlu0 %701 }
  0x9d   : > { %876 = vmatmul.mubr.msk.bf16.vlgmr.msra.gmra.mxu0 %vm192_vm1, %v917_v19 }
  0x9e   : > { %886 = vmatpush3.bf16.msra.mxu0 %v644_v20  ;;  %887 = vmatprep.mubr.msk.bf16.mxu0 %vm929_vm0, %v928_v0 }
  0xa5   : > { %888 = vmatmul.mubr.msk.bf16.vlgmr.msra.gmra.mxu0 %vm192_vm1, %v919_v21 }
  0xd2   : > { %v280_v22 = vpop.f32.mrf.mxu1 }
  0xd4   : > { %v847_v23 = vpop.f32.mrf.mxu1 }
  0xd6   : > { %v283_v24 = vpop.f32.mrf.mxu1 }
  0xd8   : > { %v848_v25 = vpop.f32.mrf.mxu1 }
  0xda   : > { %v398_v26 = vpop.f32.mrf.mxu1 }
  0xdc   : > { %v859_v27 = vpop.f32.mrf.mxu1 }
  0xde   : > { %v401_v28 = vpop.f32.mrf.mxu1 }
  0xe0   : > { %v860_v29 = vpop.f32.mrf.mxu1 }
 0x145   : > { %v230_v30 = vpop.f32.mrf.mxu0 }
 0x146   : > { %v281_v41 = vadd.f32 %v280_v22, %v230_v30 }
 0x147   : > { %v841_v31 = vpop.f32.mrf.mxu0 }
 0x149   : > { %v233_v32 = vpop.f32.mrf.mxu0 }
 0x14a   : > { %v512_v33 = vpop.f32.mrf.mxu1  ;;  %v284_v47 = vadd.f32 %v283_v24, %v233_v32 }
 0x14b   : > { %v842_v34 = vpop.f32.mrf.mxu0 }
 0x14c   : > { %v871_v35 = vpop.f32.mrf.mxu1 }
 0x14d   : > { %v335_v36 = vpop.f32.mrf.mxu0 }
 0x14e   : > { %v515_v37 = vpop.f32.mrf.mxu1  ;;  %v342_v44 = vadd.f32 %v335_v36, %v281_v41 }
 0x14f   : > { %v853_v38 = vpop.f32.mrf.mxu0 }
 0x150   : > { %v872_v39 = vpop.f32.mrf.mxu1  ;;  %v405_v50 = vadd.f32 %v398_v26, %v342_v44 }
 0x151   : > { %v338_v40 = vpop.f32.mrf.mxu0 }
 0x152   : > { %v626_v42 = vpop.f32.mrf.mxu1  ;;  %v343_v51 = vadd.f32 %v338_v40, %v284_v47 }
 0x153   : > { %v854_v43 = vpop.f32.mrf.mxu0 }
 0x154   : > { %v883_v45 = vpop.f32.mrf.mxu1  ;;  %v406_v56 = vadd.f32 %v401_v28, %v343_v51 }
 0x155   : > { %v455_v46 = vpop.f32.mrf.mxu0 }
 0x156   : > { %v629_v48 = vpop.f32.mrf.mxu1  ;;  %v462_v54 = vadd.f32 %v455_v46, %v405_v50 }
 0x157   : > { %v865_v49 = vpop.f32.mrf.mxu0 }
 0x158   : > { %v884_v52 = vpop.f32.mrf.mxu1  ;;  %v519_v58 = vadd.f32 %v512_v33, %v462_v54 }
 0x159   : > { %v458_v53 = vpop.f32.mrf.mxu0 }
 0x15a   : > { %v463_v59 = vadd.f32 %v458_v53, %v406_v56 }
 0x15b   : > { %v866_v55 = vpop.f32.mrf.mxu0 }
 0x15c   : > { %v520_v63 = vadd.f32 %v515_v37, %v463_v59 }
 0x15d   : > { %v569_v57 = vpop.f32.mrf.mxu0 }
 0x15e   : > { %v576_v61 = vadd.f32 %v569_v57, %v519_v58 }
 0x15f   : > { %v877_v60 = vpop.f32.mrf.mxu0 }
 0x160   : > { %v633_v1 = vadd.f32 %v626_v42, %v576_v61 }
 0x161   : > { %v572_v62 = vpop.f32.mrf.mxu0 }
 0x162   : > { %v577_v2 = vadd.f32 %v572_v62, %v520_v63 }
 0x163   : > { %v878_v0 = vpop.f32.mrf.mxu0 }
 0x164   : > { %v634_v7 = vadd.f32 %v629_v48, %v577_v2 }
 0x165   : > { %v683_v3 = vpop.f32.mrf.mxu0 }
 0x166   : > { %v690_v5 = vadd.f32 %v683_v3, %v633_v1 }
 0x167   : > { %v889_v6 = vpop.f32.mrf.mxu0 }
 0x168   : > { %v704_v8 = vadd.f32 %v697_v4, %v690_v5 }
 0x169   : > { %v686_v9 = vpop.f32.mrf.mxu0 }
 0x16a   : > { %v706_v11 = vmax.f32 %v704_v8, 0.0  ;;  %v691_v12 = vadd.f32 %v686_v9, %v634_v7 }
 0x16b   : > { %v890_v13 = vpop.f32.mrf.mxu0 }
 0x16c   : > { %v708_v14 = vmin.f32 %v706_v11, 20.0  ;;  %v705_v15 = vadd.f32 %v702_v10, %v691_v12 }
 0x16e   : > { %711 = vst.msk [vmem:[%s170_s23] sm:$0xff] %vm710_vm2, %v708_v14  ;;  %v707_v16 = vmax.f32 %v705_v15, 0.0 }
 0x170   : > { %v709_v17 = vmin.f32 %v707_v16, 20.0 }
 0x172   : > { %712 = vst.msk [vmem:[%s170_s23 + $0x8] sm:$0xff] %vm710_vm2, %v709_v17 }
 0x173 PF: > { %s13_s12 = sadd.s32 1, %s926_s12  }
 0x174   : > { %p10_p4 = scmp.ge.s32.totalorder %s13_s12, 4  }
 0x176   :  { %12 = sbr.rel (!%p10_p4) target bundleno = 1 (0x1), region = 71 }

</bundles_post_ra>
